<compile_context>
chip_gen: v7x
topology: tpu7x:2x2x1
jax: 0.10.0
libtpu: 0.0.40
codegen_flags: <defaults>
</compile_context>

<pallas_src>
import functools

import numpy as np

import jax
import jax.numpy as jnp
from jax.experimental import pallas as pl
from jax.experimental.pallas import tpu as pltpu


def _round_up(x, m):
    return (x + m - 1) // m * m


def cnn_kernel(x_ref, w_ref, b_ref, o_ref, *, l_out, c_out):
    """Fused banded-matmul Conv1d + max-over-length + bias + ReLU.

    x_ref: (tb, C_in*L)            lane-dense row per word (free NCW reshape)
    w_ref: (C_in*L, L_out*C_out)   banded conv weight, VMEM-resident
    b_ref: (1, C_out)              bias (f32)
    o_ref: (tb, C_out)
    """
    # One MXU matmul per block with full contraction depth and a lane-dense
    # (tb, L_out*C_out) result -- replaces K shallow shifted matmuls and the
    # spilling (L_out*tb, C_out) accumulator of the previous version.
    acc = jnp.dot(x_ref[...], w_ref[...], preferred_element_type=jnp.float32)

    # Running max over the L_out lane groups of width C_out.  Each group lies
    # inside a single 128-lane vreg whenever C_out divides 128, so the static
    # lane slices lower to cheap selects; live state stays at (tb, C_out).
    m = acc[:, 0:c_out]
    for p in range(1, l_out):
        m = jnp.maximum(m, acc[:, p * c_out:(p + 1) * c_out])

    # bias + relu AFTER the max (mathematically identical to relu-then-max).
    o_ref[...] = jnp.maximum(m + b_ref[...], 0.0).astype(o_ref.dtype)


def _banded_conv_weight(weight_ock, L, L_out, compute_dtype):
    """(C_out, C_in, K) -> banded (C_in*L, L_out*C_out) matmul weight.

    Wb[c*L + l, p*C_out + o] = W[o, c, l - p] if 0 <= l - p < K else 0,
    matching the row-major (c, l) layout of the flattened NCW input, so that
    x_flat @ Wb == conv1d(x, W) laid out as (p, o) on the lane axis.
    """
    C_out, C_in, K = weight_ock.shape
    w_cko = jnp.transpose(weight_ock, (1, 2, 0))               # (C_in, K, C_out)
    dk = jnp.arange(L)[:, None] - jnp.arange(L_out)[None, :]   # (L, L_out)
    valid = (dk >= 0) & (dk < K)
    band = w_cko[:, jnp.clip(dk, 0, K - 1), :]                 # (C_in, L, L_out, C_out)
    band = jnp.where(valid[None, :, :, None], band, jnp.zeros((), band.dtype))
    return band.reshape(C_in * L, L_out * C_out).astype(compute_dtype)


def cnn_forward(x_ncw, weight_ock, bias_o, kernel_size, *,
                block_batch=2048, compute_dtype=jnp.float32):
    """x_ncw: (B, C_in, L)  weight_ock: (C_out, C_in, K)  bias_o: (C_out,).

    Returns (B, C_out) float32.  On v6e/v7x prefer compute_dtype=jnp.bfloat16
    (kernel is HBM-bound; accumulation and epilogue stay f32).
    """
    B, C_in, L = x_ncw.shape
    C_out = weight_ock.shape[0]
    assert weight_ock.shape == (C_out, C_in, kernel_size)
    L_out = L - kernel_size + 1
    assert L_out >= 1, "max_word_length must be >= kernel_size"

    row_elems = C_in * L
    itemsize = np.dtype(compute_dtype).itemsize

    # Batch tile: multiple of 8 (sublane alignment), capped by block_batch and
    # by a per-buffer VMEM budget (double-buffered x block stays <= ~8 MiB),
    # which keeps the pipeline 2-deep even on v7x's 64 MiB VMEM.
    vmem_block_budget = 4 << 20
    cap = max(8, vmem_block_budget // max(row_elems * itemsize, 1))
    tb = _round_up(max(8, min(block_batch, cap, _round_up(B, 8))), 8)
    Bp = _round_up(B, tb)

    # Layout plumbing only -- a free, contiguous reshape (no HBM transpose).
    x_flat = x_ncw.reshape(B, row_elems).astype(compute_dtype)
    if Bp != B:
        x_flat = jnp.pad(x_flat, ((0, Bp - B), (0, 0)))

    w_banded = _banded_conv_weight(weight_ock, L, L_out, compute_dtype)
    b_2d = bias_o.reshape(1, C_out).astype(jnp.float32)

    kernel = functools.partial(cnn_kernel, l_out=L_out, c_out=C_out)

    cost = pl.CostEstimate(
        flops=2 * B * L_out * kernel_size * C_in * C_out,
        transcendentals=0,
        bytes_accessed=(Bp * row_elems * itemsize
                        + int(w_banded.size) * itemsize
                        + C_out * 4
                        + Bp * C_out * 4),
    )

    out = pl.pallas_call(
        kernel,
        out_shape=jax.ShapeDtypeStruct((Bp, C_out), jnp.float32),
        grid_spec=pltpu.PrefetchScalarGridSpec(
            num_scalar_prefetch=0,
            grid=(Bp // tb,),
            in_specs=[
                pl.BlockSpec((tb, row_elems), lambda b: (b, 0)),
                # Banded weight / bias: constant block index -> VMEM-resident.
                pl.BlockSpec((row_elems, L_out * C_out), lambda b: (0, 0)),
                pl.BlockSpec((1, C_out), lambda b: (0, 0)),
            ],
            out_specs=pl.BlockSpec((tb, C_out), lambda b: (b, 0)),
        ),
        compiler_params=pltpu.CompilerParams(
            dimension_semantics=("parallel",)),
        cost_estimate=cost,
    )(x_flat, w_banded, b_2d)

    return out[:B]


if __name__ == "__main__":
    # Small shapes consistent with the module's forward.
    batch = 37                # not a multiple of the batch tile -> exercises padding
    char_embed_size = 8
    word_embed_size = 16
    kernel_size = 5
    max_word_length = 16

    key = jax.random.PRNGKey(0)
    kx, kw, kb = jax.random.split(key, 3)

    # Deterministic synthetic parameters (shapes match nn.Conv1d).
    weight = jax.random.normal(
        kw, (word_embed_size, char_embed_size, kernel_size), jnp.float32) * 0.1
    bias = jax.random.normal(kb, (word_embed_size,), jnp.float32) * 0.1

    # Input matches PyTorch: (batch, char_embed_size, max_word_length).
    x = jax.random.normal(
        kx, (batch, char_embed_size, max_word_length), jnp.float32)

    # Exact (non-MXU) pure-JAX reference: conv1d(valid) + bias + relu + max.
    L_out = max_word_length - kernel_size + 1
    x_nlc = jnp.transpose(x, (0, 2, 1))                         # (B, L, C_in)
    ref = jnp.zeros((batch, L_out, word_embed_size), jnp.float32)
    for dk in range(kernel_size):
        w_dk = weight[:, :, dk].T                               # (C_in, C_out)
        ref = ref + jnp.sum(
            x_nlc[:, dk:dk + L_out, :, None] * w_dk[None, None, :, :], axis=2)
    ref = jnp.max(jnp.maximum(ref + bias[None, None, :], 0.0), axis=1)

    # f32 path with a tiny batch tile -> multi-step grid + batch padding.
    out_f32 = jax.block_until_ready(
        cnn_forward(x, weight, bias, kernel_size,
                    block_batch=16, compute_dtype=jnp.float32))
    assert out_f32.shape == (batch, word_embed_size)
    assert jnp.allclose(out_f32, ref, atol=1e-4, rtol=1e-4)

    # Production-style defaults (single-step grid at this tiny batch).
    out_def = jax.block_until_ready(cnn_forward(x, weight, bias, kernel_size))
    assert jnp.allclose(out_def, ref, atol=1e-4, rtol=1e-4)

    # bf16 input path (recommended on v6e/v7x; accumulation stays f32).
    out_bf16 = jax.block_until_ready(
        cnn_forward(x, weight, bias, kernel_size, compute_dtype=jnp.bfloat16))
    assert jnp.allclose(out_bf16, ref, atol=4e-2, rtol=4e-2)

    print("KERNEL_OK")
</pallas_src>

<mosaic_0001>
module attributes {stable_mosaic.version = 11 : i64} {
  func.func @cnn_kernel(%arg0: i32, %arg1: memref<16x128xf32, #tpu.memory_space<vmem>>, %arg2: memref<128x192xf32, #tpu.memory_space<vmem>>, %arg3: memref<1x16xf32, #tpu.memory_space<vmem>>, %arg4: memref<16x16xf32, #tpu.memory_space<vmem>>) attributes {dimension_semantics = [#tpu.dimension_semantics<parallel>], iteration_bounds = array<i64: 3>, scalar_prefetch = 0 : i64, scratch_operands = 0 : i64, tpu.core_type = #tpu.core_type<tc>, window_params = [{transform_indices = @transform_0, window_bounds = array<i64: 16, 128>}, {pipeline_mode = #tpu.pipeline_mode<synchronous>, transform_indices = @transform_1, window_bounds = array<i64: 128, 192>}, {pipeline_mode = #tpu.pipeline_mode<synchronous>, transform_indices = @transform_2, window_bounds = array<i64: 1, 16>}, {transform_indices = @transform_3, window_bounds = array<i64: 16, 16>}]} {
    %c0 = arith.constant 0 : index
    %c0_0 = arith.constant 0 : index
    %0 = vector.load %arg1[%c0, %c0_0] : memref<16x128xf32, #tpu.memory_space<vmem>>, vector<16x128xf32>
    %c0_1 = arith.constant 0 : index
    %c0_2 = arith.constant 0 : index
    %1 = vector.load %arg2[%c0_1, %c0_2] : memref<128x192xf32, #tpu.memory_space<vmem>>, vector<128x192xf32>
    %cst = arith.constant dense<0.000000e+00> : vector<16x192xf32>
    %2 = tpu.matmul %0, %1, %cst {dimension_numbers = #tpu.dot_dimension_numbers<[1], [0], [0], [1], [0, 0, 1, 1], [], []>} : vector<16x128xf32>, vector<128x192xf32>, vector<16x192xf32> -> vector<16x192xf32>
    %3 = vector.extract_strided_slice %2 {offsets = [0, 0], sizes = [16, 16], strides = [1, 1]} : vector<16x192xf32> to vector<16x16xf32>
    %4 = vector.extract_strided_slice %2 {offsets = [0, 16], sizes = [16, 16], strides = [1, 1]} : vector<16x192xf32> to vector<16x16xf32>
    %5 = arith.maximumf %3, %4 : vector<16x16xf32>
    %6 = vector.extract_strided_slice %2 {offsets = [0, 32], sizes = [16, 16], strides = [1, 1]} : vector<16x192xf32> to vector<16x16xf32>
    %7 = arith.maximumf %5, %6 : vector<16x16xf32>
    %8 = vector.extract_strided_slice %2 {offsets = [0, 48], sizes = [16, 16], strides = [1, 1]} : vector<16x192xf32> to vector<16x16xf32>
    %9 = arith.maximumf %7, %8 : vector<16x16xf32>
    %10 = vector.extract_strided_slice %2 {offsets = [0, 64], sizes = [16, 16], strides = [1, 1]} : vector<16x192xf32> to vector<16x16xf32>
    %11 = arith.maximumf %9, %10 : vector<16x16xf32>
    %12 = vector.extract_strided_slice %2 {offsets = [0, 80], sizes = [16, 16], strides = [1, 1]} : vector<16x192xf32> to vector<16x16xf32>
    %13 = arith.maximumf %11, %12 : vector<16x16xf32>
    %14 = vector.extract_strided_slice %2 {offsets = [0, 96], sizes = [16, 16], strides = [1, 1]} : vector<16x192xf32> to vector<16x16xf32>
    %15 = arith.maximumf %13, %14 : vector<16x16xf32>
    %16 = vector.extract_strided_slice %2 {offsets = [0, 112], sizes = [16, 16], strides = [1, 1]} : vector<16x192xf32> to vector<16x16xf32>
    %17 = arith.maximumf %15, %16 : vector<16x16xf32>
    %18 = vector.extract_strided_slice %2 {offsets = [0, 128], sizes = [16, 16], strides = [1, 1]} : vector<16x192xf32> to vector<16x16xf32>
    %19 = arith.maximumf %17, %18 : vector<16x16xf32>
    %20 = vector.extract_strided_slice %2 {offsets = [0, 144], sizes = [16, 16], strides = [1, 1]} : vector<16x192xf32> to vector<16x16xf32>
    %21 = arith.maximumf %19, %20 : vector<16x16xf32>
    %22 = vector.extract_strided_slice %2 {offsets = [0, 160], sizes = [16, 16], strides = [1, 1]} : vector<16x192xf32> to vector<16x16xf32>
    %23 = arith.maximumf %21, %22 : vector<16x16xf32>
    %24 = vector.extract_strided_slice %2 {offsets = [0, 176], sizes = [16, 16], strides = [1, 1]} : vector<16x192xf32> to vector<16x16xf32>
    %25 = arith.maximumf %23, %24 : vector<16x16xf32>
    %c0_3 = arith.constant 0 : index
    %c0_4 = arith.constant 0 : index
    %26 = vector.load %arg3[%c0_3, %c0_4] : memref<1x16xf32, #tpu.memory_space<vmem>>, vector<1x16xf32>
    %27 = vector.broadcast %26 : vector<1x16xf32> to vector<16x16xf32>
    %28 = arith.addf %25, %27 : vector<16x16xf32>
    %cst_5 = arith.constant 0.000000e+00 : f32
    %29 = vector.broadcast %cst_5 : f32 to vector<16x16xf32>
    %30 = arith.maximumf %28, %29 : vector<16x16xf32>
    %c0_6 = arith.constant 0 : index
    %c0_7 = arith.constant 0 : index
    %31 = vector.load %arg4[%c0_6, %c0_7] : memref<16x16xf32, #tpu.memory_space<vmem>>, vector<16x16xf32>
    tpu.vector_store %arg4[%c0_6, %c0_7], %30 {strides = array<i32>} : memref<16x16xf32, #tpu.memory_space<vmem>>, vector<16x16xf32>,
    return
  }
  func.func @transform_0(%arg0: i32) -> (i32, i32) {
    %c0_i32 = arith.constant 0 : i32
    %c0_i32_0 = arith.constant 0 : i32
    return %arg0, %c0_i32 : i32, i32
  }
  func.func @transform_1(%arg0: i32) -> (i32, i32) {
    %c0_i32 = arith.constant 0 : i32
    %c0_i32_0 = arith.constant 0 : i32
    %c0_i32_1 = arith.constant 0 : i32
    return %c0_i32, %c0_i32_0 : i32, i32
  }
  func.func @transform_2(%arg0: i32) -> (i32, i32) {
    %c0_i32 = arith.constant 0 : i32
    %c0_i32_0 = arith.constant 0 : i32
    %c0_i32_1 = arith.constant 0 : i32
    return %c0_i32, %c0_i32_0 : i32, i32
  }
  func.func @transform_3(%arg0: i32) -> (i32, i32) {
    %c0_i32 = arith.constant 0 : i32
    %c0_i32_0 = arith.constant 0 : i32
    return %arg0, %c0_i32 : i32, i32
  }
}

</mosaic_0001>

<bundles_post_ra>
// kernel: tpu_custom_call.1
= control target key start
LH: loop header
LB: loop body
LE: loop exit
PB: predicated region body
PF: predicated region fallthrough
CT: control target
= control target key end

     0   :  { %s553_s12 = smov 0   ;;  %s678_s0 = inlined_call_operand.vmem [shape: f32[48,128], index: 0, kind: input, shape index: {}]   ;;  %s679_s1 = inlined_call_operand.vmem [shape: f32[128,192], index: 1, kind: input, shape index: {}]   ;;  %s680_s2 = inlined_call_operand.vmem [shape: f32[1,16], index: 2, kind: input, shape index: {}]   ;;  %s681_s3 = inlined_call_operand.vmem [shape: f32[48,16], index: 3, kind: output, shape index: {}]  }
   0x1 LB: > { %s441_s13 = sadd.s32 4294967295, %s523_s12   ;;  %p445_p0 = scmp.ge.s32.totalorder %s523_s12, 1  ;;  %s523_s12 = sphi %s553_s12, %s13_s12  }
   0x2   : > { %p138_p1 = scmp.lt.s32.totalorder %s523_s12, 4 }
   0x4   : > { %p139_p2 = pnand %p445_p0, %p138_p1 }
   0x5   : > { %v177_v0 = vld [vmem:[%s679_s1 + $0x8] sm:$0xff] (!%p139_p2)  ;;  %v179_v1 = vld [vmem:[%s679_s1 + $0x18] sm:$0xff] (!%p139_p2)  ;;  %v176_v2 = vld [vmem:[%s679_s1] sm:$0xff] (!%p139_p2)  ;;  %v525_v7 = vmov (!%p139_p2), 0.0   ;;  %s446_s6 = sshll.u32 (!%p139_p2), %s441_s13, 1  ;;  %s526_s5 = smov (!%p139_p2), 96  }
   0x6   : > { %142 = sbr.rel (%p139_p2) target bundleno = 410 (0x19a), region = 32  ;;  %v453_v3 = vpack.c.bf16 (!%p139_p2), %v179_v1, %v177_v0  ;;  %v178_v4 = vld [vmem:[%s679_s1 + $0x10] sm:$0xff] (!%p139_p2)  ;;  %v181_v5 = vld [vmem:[%s679_s1 + $0x28] sm:$0xff] (!%p139_p2)  ;;  %v183_v6 = vld [vmem:[%s679_s1 + $0x38] sm:$0xff] (!%p139_p2)  ;;  %272 = vmatprep.mubr.f32.mxu0 (!%p139_p2), %v525_v7  ;;  %278 = vmatprep.mubr.f32.mxu1 (!%p139_p2), %v525_v7  ;;  %p163_p3 = scmp.lt.s32.totalorder (!%p139_p2), %s446_s6, 5  ;;  %vm382_vm0 = vcmask (!%p139_p2), 130048  }
   0x7   : > { %v455_v8 = vpack.c.bf16 (!%p139_p2), %v178_v4, %v176_v2  ;;  %v457_v9 = vpack.c.bf16 (!%p139_p2), %v183_v6, %v181_v5  ;;  %v180_v10 = vld [vmem:[%s679_s1 + $0x20] sm:$0xff] (!%p139_p2)  ;;  %v182_v11 = vld [vmem:[%s679_s1 + $0x30] sm:$0xff] (!%p139_p2)  ;;  %v185_v12 = vld [vmem:[%s679_s1 + $0x48] sm:$0xff] (!%p139_p2)  ;;  %s527_s7 = smov (!%p139_p2), 112   ;;  %s528_s8 = smov (!%p139_p2), 80  }
   0x8   : > { %454 = vmatprep.subr.bf16.mxu0 (!%p139_p2), %v453_v3  ;;  %485 = vmatprep.subr.bf16.mxu1 (!%p139_p2), %v453_v3  ;;  %v187_v13 = vld [vmem:[%s679_s1 + $0x58] sm:$0xff] (!%p139_p2)  ;;  %v459_v14 = vpack.c.bf16 (!%p139_p2), %v182_v11, %v180_v10  ;;  %v184_v16 = vld [vmem:[%s679_s1 + $0x40] sm:$0xff] (!%p139_p2)  ;;  %v186_v17 = vld [vmem:[%s679_s1 + $0x50] sm:$0xff] (!%p139_p2)  ;;  %s529_s9 = smov (!%p139_p2), 64   ;;  %s530_s10 = smov (!%p139_p2), 48  }
   0x9   : > { %456 = vmatpush1.bf16.msra.mxu0 (!%p139_p2), %v455_v8  ;;  %493 = vmatpush1.bf16.msra.mxu1 (!%p139_p2), %v455_v8  ;;  %v461_v15 = vpack.c.bf16 (!%p139_p2), %v187_v13, %v185_v12  ;;  %v189_v18 = vld [vmem:[%s679_s1 + $0x68] sm:$0xff] (!%p139_p2)  ;;  %v191_v19 = vld [vmem:[%s679_s1 + $0x78] sm:$0xff] (!%p139_p2)  ;;  %v463_v20 = vpack.c.bf16 (!%p139_p2), %v186_v17, %v184_v16  ;;  %v188_v22 = vld [vmem:[%s679_s1 + $0x60] sm:$0xff] (!%p139_p2)  ;;  %s531_s11 = smov (!%p139_p2), 32   ;;  %s532_s14 = smov (!%p139_p2), 16  }
   0xa   : > { %458 = vmatprep.subr.bf16.mxu0 (!%p139_p2), %v457_v9  ;;  %486 = vmatprep.subr.bf16.mxu1 (!%p139_p2), %v457_v9  ;;  %v465_v21 = vpack.c.bf16 (!%p139_p2), %v191_v19, %v189_v18  ;;  %v190_v23 = vld [vmem:[%s679_s1 + $0x70] sm:$0xff] (!%p139_p2)  ;;  %v193_v24 = vld [vmem:[%s679_s1 + $0x88] sm:$0xff] (!%p139_p2)  ;;  %v195_v25 = vld [vmem:[%s679_s1 + $0x98] sm:$0xff] (!%p139_p2) }
   0xb   : > { %v467_v26 = vpack.c.bf16 (!%p139_p2), %v190_v23, %v188_v22  ;;  %v469_v27 = vpack.c.bf16 (!%p139_p2), %v195_v25, %v193_v24  ;;  %v192_v28 = vld [vmem:[%s679_s1 + $0x80] sm:$0xff] (!%p139_p2)  ;;  %v194_v29 = vld [vmem:[%s679_s1 + $0x90] sm:$0xff] (!%p139_p2)  ;;  %v197_v30 = vld [vmem:[%s679_s1 + $0xa8] sm:$0xff] (!%p139_p2) }
   0xc   : > { %v199_v31 = vld [vmem:[%s679_s1 + $0xb8] sm:$0xff] (!%p139_p2)  ;;  %v471_v32 = vpack.c.bf16 (!%p139_p2), %v194_v29, %v192_v28  ;;  %v196_v34 = vld [vmem:[%s679_s1 + $0xa0] sm:$0xff] (!%p139_p2)  ;;  %v198_v35 = vld [vmem:[%s679_s1 + $0xb0] sm:$0xff] (!%p139_p2) }
   0xd   : > { %460 = vmatpush1.bf16.msra.mxu0 %v459_v14  ;;  %494 = vmatpush1.bf16.msra.mxu1 %v459_v14  ;;  %v473_v33 = vpack.c.bf16 %v199_v31, %v197_v30  ;;  %v201_v36 = vld [vmem:[%s679_s1 + $0xc8] sm:$0xff]  ;;  %v203_v37 = vld [vmem:[%s679_s1 + $0xd8] sm:$0xff]  ;;  %v475_v38 = vpack.c.bf16 %v198_v35, %v196_v34  ;;  %v200_v40 = vld [vmem:[%s679_s1 + $0xc0] sm:$0xff]  ;;  %s683_s6 = smov (!%p163_p3, %s446_s6), 5 }
   0xe   : > { %462 = vmatprep.subr.bf16.mxu0 %v461_v15  ;;  %487 = vmatprep.subr.bf16.mxu1 %v461_v15  ;;  %v477_v39 = vpack.c.bf16 %v203_v37, %v201_v36  ;;  %v202_v41 = vld [vmem:[%s679_s1 + $0xd0] sm:$0xff]  ;;  %v205_v42 = vld [vmem:[%s679_s1 + $0xe8] sm:$0xff]  ;;  %v207_v43 = vld [vmem:[%s679_s1 + $0xf8] sm:$0xff]  ;;  %s447_s28 = sshll.u32 %s683_s6, 3 }
   0xf   : > { %v479_v44 = vpack.c.bf16 %v202_v41, %v200_v40  ;;  %v481_v45 = vpack.c.bf16 %v207_v43, %v205_v42  ;;  %v204_v46 = vld [vmem:[%s679_s1 + $0xe0] sm:$0xff]  ;;  %v206_v47 = vld [vmem:[%s679_s1 + $0xf0] sm:$0xff]  ;;  %s166_s4 = scalar_lea.vmem %s678_s0, %s447_s28  ;;  %s172_s18 = scalar_lea.vmem %s681_s3, %s447_s28 }
  0x10   : > { %v483_v48 = vpack.c.bf16 %v206_v47, %v204_v46  ;;  %v174_v49 = vld [vmem:[%s166_s4] sm:$0xff]  ;;  %v175_v50 = vld [vmem:[%s166_s4 + $0x8] sm:$0xff] }
  0x11   : > { %464 = vmatpush1.bf16.msra.mxu0 %v463_v20  ;;  %495 = vmatpush1.bf16.msra.mxu1 %v463_v20  ;;  %v450_v29 = vld [vmem:[%s680_s2] ss:$0 sm:$0xff] }
  0x12   : > { %466 = vmatprep.subr.bf16.mxu0 %v465_v21  ;;  %488 = vmatprep.subr.bf16.mxu1 %v465_v21 }
  0x15   : > { %468 = vmatpush1.bf16.msra.mxu0 %v467_v26  ;;  %496 = vmatpush1.bf16.msra.mxu1 %v467_v26 }
  0x16   : > { %470 = vmatprep.subr.bf16.mxu0 %v469_v27  ;;  %489 = vmatprep.subr.bf16.mxu1 %v469_v27 }
  0x19   : > { %472 = vmatpush1.bf16.msra.mxu0 %v471_v32  ;;  %497 = vmatpush1.bf16.msra.mxu1 %v471_v32 }
  0x1a   : > { %474 = vmatprep.subr.bf16.mxu0 %v473_v33  ;;  %490 = vmatprep.subr.bf16.mxu1 %v473_v33 }
  0x1d   : > { %476 = vmatpush1.bf16.msra.mxu0 %v475_v38  ;;  %498 = vmatpush1.bf16.msra.mxu1 %v475_v38 }
  0x1e   : > { %478 = vmatprep.subr.bf16.mxu0 %v477_v39  ;;  %491 = vmatprep.subr.bf16.mxu1 %v477_v39 }
  0x21   : > { %480 = vmatpush1.bf16.msra.mxu0 %v479_v44  ;;  %499 = vmatpush1.bf16.msra.mxu1 %v479_v44 }
  0x22   : > { %482 = vmatprep.subr.bf16.mxu0 %v481_v45  ;;  %492 = vmatprep.subr.bf16.mxu1 %v481_v45 }
  0x25   : > { %484 = vmatpush1.bf16.msra.mxu0 %v483_v48  ;;  %500 = vmatpush1.bf16.msra.mxu1 %v483_v48 }
  0x28   : > { %273 = vmatmul.mubr.f32.vlgmr.msra.gmra.mrb[0].mxu0 %v174_v49  ;;  %279 = vmatmul.mubr.f32.vlgmr.msra.gmra.mrb[0].mxu1 %v175_v50 }
  0xfb   : > { %v274_v51 = vpop.f32.mrb[0].mxu0  ;;  %v280_v52 = vpop.f32.mrb[0].mxu1 }
  0xfc   : > { %295 = vrot.lane.b32.xlu1 %v274_v51, %s526_s5  ;;  %287 = vrot.lane.b32.xlu0 %v274_v51, %s527_s7  ;;  %v276_v53 = vpop.f32.mrb[1].mxu0  ;;  %v282_v54 = vpop.f32.mrb[1].mxu1 }
 0x100   : > { %297 = vrot.lane.b32.xlu1 %v280_v52, %s526_s5  ;;  %289 = vrot.lane.b32.xlu0 %v280_v52, %s527_s7 }
 0x104   : > { %305 = vrot.lane.b32.xlu1 %v280_v52, %s528_s8  ;;  %303 = vrot.lane.b32.xlu0 %v274_v51, %s528_s8 }
 0x108   : > { %313 = vrot.lane.b32.xlu1 %v280_v52, %s529_s9  ;;  %311 = vrot.lane.b32.xlu0 %v274_v51, %s529_s9 }
 0x10c   : > { %321 = vrot.lane.b32.xlu1 %v280_v52, %s530_s10  ;;  %319 = vrot.lane.b32.xlu0 %v274_v51, %s530_s10 }
 0x110   : > { %329 = vrot.lane.b32.xlu1 %v280_v52, %s531_s11  ;;  %327 = vrot.lane.b32.xlu0 %v274_v51, %s531_s11 }
 0x114   : > { %337 = vrot.lane.b32.xlu1 %v280_v52, %s532_s14  ;;  %335 = vrot.lane.b32.xlu0 %v274_v51, %s532_s14 }
 0x118   : > { %349 = vrot.lane.b32.xlu1 %v282_v54, %s527_s7  ;;  %347 = vrot.lane.b32.xlu0 %v276_v53, %s527_s7 }
 0x11c   : > { %357 = vrot.lane.b32.xlu1 %v282_v54, %s526_s5  ;;  %355 = vrot.lane.b32.xlu0 %v276_v53, %s526_s5 }
 0x120   : > { %365 = vrot.lane.b32.xlu1 %v282_v54, %s528_s8  ;;  %363 = vrot.lane.b32.xlu0 %v276_v53, %s528_s8 }
 0x16e   : > { %v296_v55 = vpop.permute.xlu1 %295  ;;  %v288_v56 = vpop.permute.xlu0 %287 }
 0x16f   : > { %v293_v62 = vmax.f32 %v274_v51, %v288_v56 }
 0x171   : > { %v301_v2 = vmax.f32 %v293_v62, %v296_v55 }
 0x172   : > { %v298_v57 = vpop.permute.xlu1 %297  ;;  %v290_v58 = vpop.permute.xlu0 %289 }
 0x173   : > { %v294_v61 = vmax.f32 %v280_v52, %v290_v58 }
 0x175   : > { %v302_v1 = vmax.f32 %v294_v61, %v298_v57 }
 0x176   : > { %v306_v59 = vpop.permute.xlu1 %305  ;;  %v304_v60 = vpop.permute.xlu0 %303 }
 0x177   : > { %v310_v5 = vmax.f32 %v302_v1, %v306_v59  ;;  %v309_v6 = vmax.f32 %v301_v2, %v304_v60 }
 0x17a   : > { %v314_v63 = vpop.permute.xlu1 %313  ;;  %v312_v0 = vpop.permute.xlu0 %311 }
 0x17b   : > { %v318_v7 = vmax.f32 %v310_v5, %v314_v63  ;;  %v317_v8 = vmax.f32 %v309_v6, %v312_v0 }
 0x17e   : > { %v322_v3 = vpop.permute.xlu1 %321  ;;  %v320_v4 = vpop.permute.xlu0 %319 }
 0x17f   : > { %v326_v11 = vmax.f32 %v318_v7, %v322_v3  ;;  %v325_v12 = vmax.f32 %v317_v8, %v320_v4 }
 0x182   : > { %v330_v9 = vpop.permute.xlu1 %329  ;;  %v328_v10 = vpop.permute.xlu0 %327 }
 0x183   : > { %v334_v13 = vmax.f32 %v326_v11, %v330_v9  ;;  %v333_v14 = vmax.f32 %v325_v12, %v328_v10 }
 0x186   : > { %v338_v15 = vpop.permute.xlu1 %337  ;;  %v336_v16 = vpop.permute.xlu0 %335 }
 0x187   : > { %v342_v17 = vmax.f32 %v334_v13, %v338_v15  ;;  %v341_v18 = vmax.f32 %v333_v14, %v336_v16 }
 0x189   : > { %v344_v19 = vmax.f32 %v342_v17, %v282_v54  ;;  %v343_v20 = vmax.f32 %v341_v18, %v276_v53 }
 0x18a   : > { %v350_v21 = vpop.permute.xlu1 %349  ;;  %v348_v22 = vpop.permute.xlu0 %347 }
 0x18b   : > { %v354_v25 = vmax.f32 %v344_v19, %v350_v21  ;;  %v353_v26 = vmax.f32 %v343_v20, %v348_v22 }
 0x18e   : > { %v358_v23 = vpop.permute.xlu1 %357  ;;  %v356_v24 = vpop.permute.xlu0 %355 }
 0x18f   : > { %v362_v27 = vmax.f32 %v354_v25, %v358_v23  ;;  %v361_v28 = vmax.f32 %v353_v26, %v356_v24 }
 0x192   : > { %v366_v30 = vpop.permute.xlu1 %365  ;;  %v364_v31 = vpop.permute.xlu0 %363 }
 0x193   : > { %v370_v32 = vmax.f32 %v362_v27, %v366_v30  ;;  %v369_v33 = vmax.f32 %v361_v28, %v364_v31 }
 0x195   : > { %v379_v34 = vadd.f32 %v450_v29, %v370_v32  ;;  %v378_v35 = vadd.f32 %v450_v29, %v369_v33 }
 0x197   : > { %v381_v36 = vmax.f32 %v379_v34, 0.0  ;;  %v380_v37 = vmax.f32 %v378_v35, 0.0 }
 0x199   : > { %383 = vst.msk [vmem:[%s172_s18] sm:$0xff] %vm382_vm0, %v380_v37  ;;  %384 = vst.msk [vmem:[%s172_s18 + $0x8] sm:$0xff] %vm382_vm0, %v381_v36 }
 0x19a PF: > { %s13_s12 = sadd.s32 1, %s523_s12  }
 0x19b   : > { %p10_p4 = scmp.ge.s32.totalorder %s13_s12, 5  }
 0x19d   :  { %12 = sbr.rel (!%p10_p4) target bundleno = 1 (0x1), region = 62 }

</bundles_post_ra>
